<compile_context>
chip_gen: v6e
topology: v6e:2x2x1
jax: 0.10.0
libtpu: 0.0.40
codegen_flags: <defaults>
</compile_context>

<pallas_src>
import jax
import jax.numpy as jnp
from jax.experimental import pallas as pl
from jax.experimental.pallas import tpu as pltpu


OUT_WIDTH = 128   # lane-dense output slab width
HID_PAD = 128     # lane-padded fused hidden width (2 * 32 padded to 128)


# ---------------------------------------------------------------------------
# Kernel
# ---------------------------------------------------------------------------
def a2c_fused_kernel(x_ref, w1_ref, w2_ref, w3_ref, b_ref, out_ref):
    """Fused actor+critic MLP forward.

    x_ref  : [B, F]        bf16
    w1_ref : [F, 128]      bf16   (critic/actor layer-1 weights, lane-padded)
    w2_ref : [128, 128]    bf16   (block-diagonal layer-2 weights, padded)
    w3_ref : [128, 128]    bf16   (block-diagonal layer-3 weights, padded)
    b_ref  : [3, 128]      f32    (packed biases; rows = layer 1 / 2 / 3)
    out_ref: [B, 128]      f32    (col 0 = value, cols 1..A = logits, rest pad)
    """
    x = x_ref[...]
    biases = b_ref[...]                       # [3, 128] f32, loaded once

    # Layer 1 (shared input, both heads): MXU bf16, accumulate f32.
    h = jnp.dot(x, w1_ref[...], preferred_element_type=jnp.float32)
    h = jnp.maximum(h + biases[0:1, :], 0.0)  # full 128-lane add, no mask

    # Layer 2 (block diagonal keeps the two heads independent).
    h = jnp.dot(h.astype(w2_ref.dtype), w2_ref[...],
                preferred_element_type=jnp.float32)
    h = jnp.maximum(h + biases[1:2, :], 0.0)

    # Layer 3 -> lane-dense [B, 128] output slab.
    o = jnp.dot(h.astype(w3_ref.dtype), w3_ref[...],
                preferred_element_type=jnp.float32)
    out_ref[...] = o + biases[2:3, :]


# ---------------------------------------------------------------------------
# Wrapper: param packing + pallas_call
# ---------------------------------------------------------------------------
def pack_a2c_params(critic_params, actor_params, n_actions,
                    compute_dtype=jnp.bfloat16):
    """Packs the two heads' params into 3 fused weight mats + 1 bias array.

    Done once, outside the kernel (wrapper-side layout plumbing only).
    """
    cw1, cb1, cw2, cb2, cw3, cb3 = critic_params
    aw1, ab1, aw2, ab2, aw3, ab3 = actor_params
    n_features = cw1.shape[0]
    h = cw1.shape[1]              # hidden (32)
    h2 = 2 * h                    # 64 (both heads side by side)
    assert h2 <= HID_PAD and 1 + n_actions <= OUT_WIDTH

    # Layer 1: shared input -> concatenate output columns, pad to 128 lanes.
    w1 = jnp.zeros((n_features, HID_PAD), jnp.float32)
    w1 = w1.at[:, :h].set(cw1).at[:, h:h2].set(aw1)                 # [F, 128]

    # Layer 2: block diagonal so the heads stay independent, padded.
    w2 = jnp.zeros((HID_PAD, HID_PAD), jnp.float32)
    w2 = w2.at[:h, :h].set(cw2).at[h:h2, h:h2].set(aw2)             # [128, 128]

    # Layer 3: block diagonal, padded to the output slab width.
    w3 = jnp.zeros((HID_PAD, OUT_WIDTH), jnp.float32)
    w3 = w3.at[:h, 0:1].set(cw3).at[h:h2, 1:1 + n_actions].set(aw3)  # [128,128]

    # Pack all biases into one [3, 128] array (one input DMA instead of six).
    biases = jnp.zeros((3, OUT_WIDTH), jnp.float32)
    biases = biases.at[0, :h].set(cb1[0]).at[0, h:h2].set(ab1[0])
    biases = biases.at[1, :h].set(cb2[0]).at[1, h:h2].set(ab2[0])
    biases = biases.at[2, 0:1].set(cb3[0])
    biases = biases.at[2, 1:1 + n_actions].set(ab3[0])

    return (w1.astype(compute_dtype),
            w2.astype(compute_dtype),
            w3.astype(compute_dtype),
            biases)


def a2c_forward(x, packed_params, n_actions):
    """Fused A2C forward.

    Args:
      x: [n_envs, n_features] float32 batch of states.
      packed_params: output of pack_a2c_params.
      n_actions: number of discrete actions.

    Returns:
      state_values : [n_envs, 1] float32
      action_logits: [n_envs, n_actions] float32
    """
    w1, w2, w3, biases = packed_params
    n_envs = x.shape[0]

    # Pad batch to a multiple of 8 sublanes only when needed (no-op here).
    b_pad = ((n_envs + 7) // 8) * 8
    xb = x if b_pad == n_envs else jnp.pad(x, ((0, b_pad - n_envs), (0, 0)))

    vmem = pl.BlockSpec(memory_space=pltpu.MemorySpace.VMEM)
    out = pl.pallas_call(
        a2c_fused_kernel,
        out_shape=jax.ShapeDtypeStruct((b_pad, OUT_WIDTH), jnp.float32),
        in_specs=[vmem] * 5,
        out_specs=vmem,
    )(xb.astype(w1.dtype), w1, w2, w3, biases)

    # Split the lane-dense slab in the wrapper.
    state_values = out[:n_envs, 0:1]
    action_logits = out[:n_envs, 1:1 + n_actions]
    return state_values, action_logits


# TODO(synk): callers should batch multiple rollout timesteps into one call
# (or wrap per-step calls in lax.scan) so host dispatch doesn't dominate.


# ---------------------------------------------------------------------------
# Init helpers (mimic nn.Linear's uniform(-1/sqrt(fan_in), 1/sqrt(fan_in)))
# ---------------------------------------------------------------------------
def init_linear(key, fan_in, fan_out):
    kw, kb = jax.random.split(key)
    bound = 1.0 / jnp.sqrt(float(fan_in))
    w = jax.random.uniform(kw, (fan_in, fan_out), jnp.float32, -bound, bound)
    b = jax.random.uniform(kb, (1, fan_out), jnp.float32, -bound, bound)
    return w, b


def init_mlp(key, n_features, hidden, n_out):
    k1, k2, k3 = jax.random.split(key, 3)
    w1, b1 = init_linear(k1, n_features, hidden)
    w2, b2 = init_linear(k2, hidden, hidden)
    w3, b3 = init_linear(k3, hidden, n_out)
    return (w1, b1, w2, b2, w3, b3)


if __name__ == "__main__":
    # Shapes consistent with A2C.forward(): x [n_envs, n_features] ->
    # values [n_envs, 1], logits [n_envs, n_actions].
    n_envs, n_features, n_actions, hidden = 8, 16, 4, 32

    key = jax.random.PRNGKey(0)
    kx, kc, ka = jax.random.split(key, 3)

    x = jax.random.normal(kx, (n_envs, n_features), jnp.float32)
    critic_params = init_mlp(kc, n_features, hidden, 1)
    actor_params = init_mlp(ka, n_features, hidden, n_actions)

    packed = pack_a2c_params(critic_params, actor_params, n_actions)
    state_values, action_logits = a2c_forward(x, packed, n_actions)
    jax.block_until_ready((state_values, action_logits))

    # Pure-JAX f32 reference of the original (unfused) module semantics.
    def mlp_ref(x, params):
        w1, b1, w2, b2, w3, b3 = params
        h = jnp.maximum(x @ w1 + b1, 0.0)
        h = jnp.maximum(h @ w2 + b2, 0.0)
        return h @ w3 + b3

    ref_values = mlp_ref(x, critic_params)
    ref_logits = mlp_ref(x, actor_params)

    # bf16 MXU inputs with f32 accumulation -> loose-ish tolerance vs f32 ref.
    assert state_values.shape == (n_envs, 1)
    assert action_logits.shape == (n_envs, n_actions)
    assert jnp.allclose(state_values, ref_values, atol=5e-2, rtol=5e-2), (
        "values mismatch")
    assert jnp.allclose(action_logits, ref_logits, atol=5e-2, rtol=5e-2), (
        "logits mismatch")

    print("KERNEL_OK")
</pallas_src>

<mosaic_0001>
module attributes {stable_mosaic.version = 11 : i64} {
  func.func @a2c_fused_kernel(%arg0: memref<8x16xbf16, #tpu.memory_space<vmem>>, %arg1: memref<16x128xbf16, #tpu.memory_space<vmem>>, %arg2: memref<128x128xbf16, #tpu.memory_space<vmem>>, %arg3: memref<128x128xbf16, #tpu.memory_space<vmem>>, %arg4: memref<3x128xf32, #tpu.memory_space<vmem>>, %arg5: memref<8x128xf32, #tpu.memory_space<vmem>>) attributes {dimension_semantics = [], scalar_prefetch = 0 : i64, scratch_operands = 0 : i64, tpu.core_type = #tpu.core_type<tc>} {
    %c0 = arith.constant 0 : index
    %c0_0 = arith.constant 0 : index
    %0 = vector.load %arg0[%c0, %c0_0] : memref<8x16xbf16, #tpu.memory_space<vmem>>, vector<8x16xbf16>
    %c0_1 = arith.constant 0 : index
    %c0_2 = arith.constant 0 : index
    %1 = vector.load %arg4[%c0_1, %c0_2] : memref<3x128xf32, #tpu.memory_space<vmem>>, vector<3x128xf32>
    %c0_3 = arith.constant 0 : index
    %c0_4 = arith.constant 0 : index
    %2 = vector.load %arg1[%c0_3, %c0_4] : memref<16x128xbf16, #tpu.memory_space<vmem>>, vector<16x128xbf16>
    %cst = arith.constant dense<0.000000e+00> : vector<8x128xf32>
    %3 = tpu.matmul %0, %2, %cst {dimension_numbers = #tpu.dot_dimension_numbers<[1], [0], [0], [1], [0, 0, 1, 1], [], []>} : vector<8x16xbf16>, vector<16x128xbf16>, vector<8x128xf32> -> vector<8x128xf32>
    %4 = vector.extract_strided_slice %1 {offsets = [0, 0], sizes = [1, 128], strides = [1, 1]} : vector<3x128xf32> to vector<1x128xf32>
    %5 = vector.broadcast %4 : vector<1x128xf32> to vector<8x128xf32>
    %6 = arith.addf %3, %5 : vector<8x128xf32>
    %cst_5 = arith.constant 0.000000e+00 : f32
    %7 = vector.broadcast %cst_5 : f32 to vector<8x128xf32>
    %8 = arith.maximumf %6, %7 : vector<8x128xf32>
    %9 = arith.truncf %8 : vector<8x128xf32> to vector<8x128xbf16>
    %c0_6 = arith.constant 0 : index
    %c0_7 = arith.constant 0 : index
    %10 = vector.load %arg2[%c0_6, %c0_7] : memref<128x128xbf16, #tpu.memory_space<vmem>>, vector<128x128xbf16>
    %cst_8 = arith.constant dense<0.000000e+00> : vector<8x128xf32>
    %11 = tpu.matmul %9, %10, %cst_8 {dimension_numbers = #tpu.dot_dimension_numbers<[1], [0], [0], [1], [0, 0, 1, 1], [], []>} : vector<8x128xbf16>, vector<128x128xbf16>, vector<8x128xf32> -> vector<8x128xf32>
    %12 = vector.extract_strided_slice %1 {offsets = [1, 0], sizes = [1, 128], strides = [1, 1]} : vector<3x128xf32> to vector<1x128xf32>
    %13 = vector.broadcast %12 : vector<1x128xf32> to vector<8x128xf32>
    %14 = arith.addf %11, %13 : vector<8x128xf32>
    %cst_9 = arith.constant 0.000000e+00 : f32
    %15 = vector.broadcast %cst_9 : f32 to vector<8x128xf32>
    %16 = arith.maximumf %14, %15 : vector<8x128xf32>
    %17 = arith.truncf %16 : vector<8x128xf32> to vector<8x128xbf16>
    %c0_10 = arith.constant 0 : index
    %c0_11 = arith.constant 0 : index
    %18 = vector.load %arg3[%c0_10, %c0_11] : memref<128x128xbf16, #tpu.memory_space<vmem>>, vector<128x128xbf16>
    %cst_12 = arith.constant dense<0.000000e+00> : vector<8x128xf32>
    %19 = tpu.matmul %17, %18, %cst_12 {dimension_numbers = #tpu.dot_dimension_numbers<[1], [0], [0], [1], [0, 0, 1, 1], [], []>} : vector<8x128xbf16>, vector<128x128xbf16>, vector<8x128xf32> -> vector<8x128xf32>
    %20 = vector.extract_strided_slice %1 {offsets = [2, 0], sizes = [1, 128], strides = [1, 1]} : vector<3x128xf32> to vector<1x128xf32>
    %21 = vector.broadcast %20 : vector<1x128xf32> to vector<8x128xf32>
    %22 = arith.addf %19, %21 : vector<8x128xf32>
    %c0_13 = arith.constant 0 : index
    %c0_14 = arith.constant 0 : index
    %23 = vector.load %arg5[%c0_13, %c0_14] : memref<8x128xf32, #tpu.memory_space<vmem>>, vector<8x128xf32>
    tpu.vector_store %arg5[%c0_13, %c0_14], %22 {strides = array<i32>} : memref<8x128xf32, #tpu.memory_space<vmem>>, vector<8x128xf32>,
    return
  }
}

</mosaic_0001>

<bundles_post_ra>
// kernel: tpu_custom_call.1
= control target key start
LH: loop header
LB: loop body
LE: loop exit
PB: predicated region body
PF: predicated region fallthrough
CT: control target
= control target key end

     0   :  { %10 = vsyncpa [#allocation3], 0  ;;  %s675_s0 = inlined_call_operand.hbm [shape: bf16[8,16], index: 0, kind: input, shape index: {}]   ;;  %s676_s1 = inlined_call_operand.hbm [shape: bf16[16,128], index: 1, kind: input, shape index: {}]   ;;  %s677_s2 = inlined_call_operand.hbm [shape: bf16[128,128], index: 2, kind: input, shape index: {}]   ;;  %s678_s3 = inlined_call_operand.hbm [shape: bf16[128,128], index: 3, kind: input, shape index: {}]   ;;  %s679_s4 = inlined_call_operand.vmem [shape: f32[3,128], index: 4, kind: input, shape index: {}]   ;;  %s680_s5 = inlined_call_operand.hbm [shape: f32[8,128], index: 5, kind: output, shape index: {}]  }
   0x1   :  { %11 = vsyncpa [#allocation6], 0 }
   0x2   :  { %12 = vsyncpa [#allocation9], 0 }
   0x3   :  { %13 = vsyncpa [#allocation4], 0  ;;  %s589_s18 = smov [#allocation5]  }
   0x4   :  { %s29_s19 = sshll.u32 %s589_s18, 4  ;;  %s30_s19 = int_to_ptr.vmem [resolvable:$true] %s29_s19 }
   0x5   :  { %s489_s20 = scalar_lea.vmem %s30_s19, 128  ;;  %p494_p1 = scmp.lt.s32.totalorder %s30_s19, %s30_s19 }
   0x6   :  { %p490_p0 = scmp.ne.s32.totalorder %s30_s19, %s489_s20  ;;  %p495_p2 = scmp.lt.s32.totalorder %s489_s20, %s489_s20 }
   0x8   :  { %p496_p3 = por %p495_p2, %p494_p1 }
   0xa   :  { %p497_p4 = pnand %p496_p3, %p490_p0 }
   0xc   :  { %500 = shalt.err (!%p497_p4)
}
   0xd   :  { %s590_s21 = smov 64   ;;  %s591_s22 = smov 4  }
   0xe   :  { %35 = dma.hbm_to_vmem [thread:$0]  %s676_s1, 128, %s30_s19, [#allocation6], %s590_s21, %s590_s21, %s591_s22  }
   0xf   :  { %s592_s25 = smov [#allocation2]   ;;  %s593_s27 = smov [#allocation7]  }
  0x10   :  { %s20_s26 = sshll.u32 %s592_s25, 4  ;;  %s41_s28 = sshll.u32 %s593_s27, 4  ;;  %s21_s26 = int_to_ptr.vmem [resolvable:$true] %s20_s26  ;;  %s42_s28 = int_to_ptr.vmem [resolvable:$true] %s41_s28 }
  0x11   :  { %s509_s29 = scalar_lea.vmem %s21_s26, 64  ;;  %p514_p6 = scmp.lt.s32.totalorder %s21_s26, %s21_s26 }
  0x12   :  { %p510_p5 = scmp.ne.s32.totalorder %s21_s26, %s509_s29  ;;  %p515_p7 = scmp.lt.s32.totalorder %s509_s29, %s509_s29 }
  0x14   :  { %p516_p8 = por %p515_p7, %p514_p6 }
  0x16   :  { %p517_p9 = pnand %p516_p8, %p510_p5 }
  0x18   :  { %520 = shalt.err (!%p517_p9)
}
  0x19   :  { %23 = dma.hbm_to_vmem [thread:$0]  %s675_s0, 64, %s21_s26, [#allocation3]  }
  0x1a   :  { %s529_s7 = scalar_lea.vmem %s42_s28, 1024  ;;  %p534_p11 = scmp.lt.s32.totalorder %s42_s28, %s42_s28 }
  0x1b   :  { %p530_p10 = scmp.ne.s32.totalorder %s42_s28, %s529_s7  ;;  %p535_p12 = scmp.lt.s32.totalorder %s529_s7, %s529_s7 }
  0x1d   :  { %p536_p13 = por %p535_p12, %p534_p11 }
  0x1f   :  { %p537_p0 = pnand %p536_p13, %p530_p10 }
  0x21   :  { %540 = shalt.err (!%p537_p0)
}
  0x22   :  { %47 = dma.hbm_to_vmem [thread:$0]  %s677_s2, 1024, %s42_s28, [#allocation6], %s590_s21, %s590_s21, %s591_s22  }
  0x23   :  { %s594_s9 = smov [#allocation8]  }
  0x24   :  { %s53_s10 = sshll.u32 %s594_s9, 4  ;;  %s54_s10 = int_to_ptr.vmem [resolvable:$true] %s53_s10 }
  0x25   :  { %s549_s11 = scalar_lea.vmem %s54_s10, 1024  ;;  %p554_p2 = scmp.lt.s32.totalorder %s54_s10, %s54_s10 }
  0x26   :  { %p550_p1 = scmp.ne.s32.totalorder %s54_s10, %s549_s11  ;;  %p555_p3 = scmp.lt.s32.totalorder %s549_s11, %s549_s11 }
  0x28   :  { %p556_p4 = por %p555_p3, %p554_p2 }
  0x2a   :  { %p557_p5 = pnand %p556_p4, %p550_p1 }
  0x2c   :  { %560 = shalt.err (!%p557_p5)
}
  0x2d   :  { %59 = dma.hbm_to_vmem [thread:$0]  %s678_s3, 1024, %s54_s10, [#allocation9], %s590_s21, %s590_s21, %s591_s22  }
  0x2e   :  { %581 = dma.done.wait [#allocation3], 64  }
  0x2f   :  { %582 = vsyncadd [#allocation3], 4294967232 }
  0x30   :  { %583 = dma.done.wait [#allocation6], 1152  }
  0x31   :  { %584 = vsyncadd [#allocation6], 4294966144 }
  0x32   :  { %585 = dma.done.wait [#allocation9], 1024  }
  0x33   :  { %586 = vsyncadd [#allocation9], 4294966272  ;;  %v595_v0 = vmov 0.0   ;;  %vm596_vm0 = vmmov 0   ;;  %v464_v1 = vld [vmem:[#allocation5] sm:$0xff]   ;;  %vm89_vm1 = vcmask 130048   ;;  %v79_v17 = vlaneseq }
  0x34   :  { %409 = vmatprep.subr.bf16.mxu0 %v595_v0  ;;  %411 = vmatprep.mubr.msk.bf16.mxu0 %vm596_vm0, %v595_v0  ;;  %v75_v2 = vld [vmem:[#allocation2] sm:$0xf]  ;;  %v465_v3 = vld [vmem:[#allocation7 + $0x38] sm:$0xff]   ;;  %v467_v5 = vld [vmem:[#allocation7 + $0x28] sm:$0xff]  }
  0x35   :  { %415 = vmatprep.subr.bf16.mxu1 %v595_v0  ;;  %431 = vmatprep.mubr.msk.bf16.mxu1 %vm596_vm0, %v595_v0  ;;  %v466_v4 = vld [vmem:[#allocation7 + $0x30] sm:$0xff]   ;;  %v468_v6 = vld [vmem:[#allocation7 + $0x20] sm:$0xff]   ;;  %v469_v7 = vld [vmem:[#allocation7 + $0x18] sm:$0xff]   ;;  %v80_v18 = vshrl.u32 %v79_v17, 7 }
  0x36   :  { %410 = vmatpush3.bf16.msra.mxu0 %v464_v1  ;;  %416 = vmatpush3.bf16.msra.mxu1 %v465_v3  ;;  %v470_v8 = vld [vmem:[#allocation7 + $0x10] sm:$0xff]   ;;  %v471_v9 = vld [vmem:[#allocation7 + $0x8] sm:$0xff]   ;;  %v472_v10 = vld [vmem:[#allocation7] sm:$0xff]  }
  0x37   :  { %435 = vmatprep.subr.bf16.mxu0 %v595_v0  ;;  %417 = vmatprep.subr.bf16.mxu1 %v595_v0  ;;  %v473_v11 = vld [vmem:[#allocation8 + $0x38] sm:$0xff]   ;;  %v474_v12 = vld [vmem:[#allocation8 + $0x30] sm:$0xff]   ;;  %v475_v13 = vld [vmem:[#allocation8 + $0x28] sm:$0xff]   ;;  %v81_v19 = vsub.s32 0, %v80_v18  ;;  %v153_v31 = vsub.s32 1, %v80_v18  ;;  %v263_v40 = vsub.s32 2, %v80_v18 }
  0x38   :  { %v476_v14 = vld [vmem:[#allocation8 + $0x20] sm:$0xff]   ;;  %v477_v15 = vld [vmem:[#allocation8 + $0x18] sm:$0xff]   ;;  %v478_v16 = vld [vmem:[#allocation8 + $0x10] sm:$0xff]  }
  0x39   :  { %412 = vmatmul.mubr.msk.bf16.vlgmr.msra.gmra.mxu0 %vm89_vm1, %v75_v2  ;;  %v76_v20 = vld [vmem:[%s679_s4] sm:$0x7]  ;;  %v479_v29 = vld [vmem:[#allocation8 + $0x8] sm:$0xff]   ;;  %v480_v30 = vld [vmem:[#allocation8] sm:$0xff]   ;;  %s597_s4 = smov [#allocation10]  }
  0x3a   :  { %451 = vmatprep.mubr.msk.bf16.mxu0 %vm596_vm0, %v595_v0  ;;  %418 = vmatpush3.bf16.msra.mxu1 %v466_v4  ;;  %v82_v21 = vrot.slane %v76_v20, %v81_v19  ;;  %v154_v32 = vrot.slane %v76_v20, %v153_v31  ;;  %v264_v41 = vrot.slane %v76_v20, %v263_v40  ;;  %s360_s13 = sshll.u32 %s597_s4, 4  ;;  %s361_s13 = int_to_ptr.vmem [resolvable:$true] %s360_s13 }
  0x3b   :  { %419 = vmatprep.subr.bf16.mxu1 %v595_v0  ;;  %436 = vmatpush3.bf16.msra.mxu0 %v473_v11  ;;  %s561_s14 = scalar_lea.vmem %s361_s13, 128  ;;  %p566_p7 = scmp.lt.s32.totalorder %s361_s13, %s361_s13 }
  0x3c   :  { %437 = vmatprep.subr.bf16.mxu0 %v595_v0  ;;  %p562_p6 = scmp.ne.s32.totalorder %s361_s13, %s561_s14  ;;  %p567_p8 = scmp.lt.s32.totalorder %s561_s14, %s561_s14 }
  0x3e   :  { %420 = vmatpush3.bf16.msra.mxu1 %v467_v5  ;;  %p568_p9 = por %p567_p8, %p566_p7 }
  0x3f   :  { %421 = vmatprep.subr.bf16.mxu1 %v595_v0  ;;  %438 = vmatpush3.bf16.msra.mxu0 %v474_v12 }
  0x40   :  { %439 = vmatprep.subr.bf16.mxu0 %v595_v0  ;;  %p569_p10 = pnand %p568_p9, %p562_p6 }
  0x42   :  { %422 = vmatpush3.bf16.msra.mxu1 %v468_v6 }
  0x43   :  { %423 = vmatprep.subr.bf16.mxu1 %v595_v0  ;;  %440 = vmatpush3.bf16.msra.mxu0 %v475_v13 }
  0x44   :  { %441 = vmatprep.subr.bf16.mxu0 %v595_v0 }
  0x46   :  { %424 = vmatpush3.bf16.msra.mxu1 %v469_v7 }
  0x47   :  { %425 = vmatprep.subr.bf16.mxu1 %v595_v0  ;;  %442 = vmatpush3.bf16.msra.mxu0 %v476_v14 }
  0x48   :  { %443 = vmatprep.subr.bf16.mxu0 %v595_v0 }
  0x4a   :  { %426 = vmatpush3.bf16.msra.mxu1 %v470_v8 }
  0x4b   :  { %427 = vmatprep.subr.bf16.mxu1 %v595_v0  ;;  %444 = vmatpush3.bf16.msra.mxu0 %v477_v15 }
  0x4c   :  { %445 = vmatprep.subr.bf16.mxu0 %v595_v0 }
  0x4e   :  { %428 = vmatpush3.bf16.msra.mxu1 %v471_v9 }
  0x4f   :  { %429 = vmatprep.subr.bf16.mxu1 %v595_v0  ;;  %446 = vmatpush3.bf16.msra.mxu0 %v478_v16 }
  0x50   :  { %447 = vmatprep.subr.bf16.mxu0 %v595_v0 }
  0x52   :  { %430 = vmatpush3.bf16.msra.mxu1 %v472_v10 }
  0x53   :  { %448 = vmatpush3.bf16.msra.mxu0 %v479_v29 }
  0x54   :  { %449 = vmatprep.subr.bf16.mxu0 %v595_v0 }
  0x57   :  { %450 = vmatpush3.bf16.msra.mxu0 %v480_v30 }
  0xf9   :  { %v127_v22 = vpop.f32.mrf.mxu0 }
  0xfa   :  { %v128_v23 = vadd.f32 %v127_v22, %v82_v21 }
  0xfb   :  { %v413_v24 = vpop.f32.mrf.mxu0 }
  0xfc   :  { %v133_v25 = vmax.f32 %v128_v23, 0.0 }
  0xfd   :  { %v130_v26 = vpop.f32.mrf.mxu0 }
  0xfe   :  { %v134_v27 = vpack.c.bf16 %v133_v25, %v133_v25 }
  0xff   :  { %v414_v28 = vpop.f32.mrf.mxu0 }
 0x100   :  { %432 = vmatmul.mubr.bf16.vlgmr.msra.gmra.mxu1 %v134_v27 }
 0x1c0   :  { %v237_v33 = vpop.f32.mrf.mxu1 }
 0x1c1   :  { %v238_v34 = vadd.f32 %v237_v33, %v154_v32 }
 0x1c2   :  { %v433_v35 = vpop.f32.mrf.mxu1 }
 0x1c3   :  { %v243_v36 = vmax.f32 %v238_v34, 0.0 }
 0x1c4   :  { %v240_v37 = vpop.f32.mrf.mxu1 }
 0x1c5   :  { %v244_v38 = vpack.c.bf16 %v243_v36, %v243_v36 }
 0x1c6   :  { %v434_v39 = vpop.f32.mrf.mxu1 }
 0x1c7   :  { %452 = vmatmul.mubr.bf16.vlgmr.msra.gmra.mxu0 %v244_v38 }
 0x287   :  { %v347_v42 = vpop.f32.mrf.mxu0 }
 0x288   :  { %v348_v43 = vadd.f32 %v347_v42, %v264_v41 }
 0x289   :  { %v453_v44 = vpop.f32.mrf.mxu0 }
 0x28a   :  { %353 = vst [vmem:[#allocation10] sm:$0xff] %v348_v43 }
 0x28b   :  { %v350_v45 = vpop.f32.mrf.mxu0 }
 0x28c   :  { %572 = shalt.err (!%p569_p10)
}
 0x28d   :  { %363 = dma.vmem_to_hbm [thread:$0]  %s361_s13, 128, %s680_s5, [#allocation4]   ;;  %v454_v46 = vpop.f32.mrf.mxu0 }
 0x28e   :  { %587 = dma.done.wait [#allocation4], 128  }
 0x28f   :  { %588 = vsyncadd [#allocation4], 4294967168 }
 0x290   :  { %367 = vsyncpa [#allocation3], 1 }
 0x291   :  { %368 = vsyncpa [#allocation6], 1 }
 0x292   :  { %369 = vsyncpa [#allocation9], 1 }
 0x293   :  { %370 = vsyncpa [#allocation4], 1 }

</bundles_post_ra>
